<compile_context>
chip_gen: v6e
topology: v6e:2x2x1
jax: 0.10.0
libtpu: 0.0.40
codegen_flags: <defaults>
</compile_context>

<pallas_src>
import functools

import jax
import jax.numpy as jnp
import numpy as np
from jax import lax
from jax.experimental import pallas as pl
from jax.experimental.pallas import tpu as pltpu

_NUM_ITERS = 10  # safeguarded-Newton passes; each pass is the closed-form tau
                 # over the current support, so extra passes are exact no-ops.


def _sparsemax_kernel(x_ref, o_ref, *, num_iters):
    """Sparsemax over the last (lane) axis of a (TM, N) tile."""
    x = x_ref[...].astype(jnp.float32)                     # (TM, N)
    mx = jnp.max(x, axis=-1, keepdims=True)                # (TM, 1); z = x - mx implicit
    tm = x.shape[0]
    t0 = jnp.full((tm, 1), -1.0, dtype=jnp.float32)        # t = tau - max(x); root in [-1, 0]

    def body(_, t):
        d = x - (mx + t)                                   # broadcast subtract (VPU)
        s = jnp.sum(jnp.maximum(d, 0.0), axis=-1, keepdims=True)              # sum relu(z - t)
        k = jnp.sum((d > 0.0).astype(jnp.float32), axis=-1, keepdims=True)    # support size
        # Newton from the left on convex piecewise-linear f: never overshoots,
        # equals the exact closed-form tau over the current support.
        return t + (s - 1.0) / jnp.maximum(k, 1.0)

    t = lax.fori_loop(0, num_iters, body, t0, unroll=True)
    o_ref[...] = jnp.maximum(x - (mx + t), 0.0).astype(o_ref.dtype)


def _vmem_budget():
    """Generation-aware tile cap / scoped-VMEM limit (conservative fallback)."""
    try:
        kind = jax.devices()[0].device_kind.lower()
    except Exception:
        kind = ""
    if "v5" in kind or "v6" in kind:
        # 128 MiB physical VMEM: allow bigger tiles / limit for pipeline slack.
        return 4 * 1024 * 1024, 64 * 1024 * 1024
    # v7x (64 MiB / TC) or unknown: keep tiles and scoped limit conservative.
    return 2 * 1024 * 1024, 32 * 1024 * 1024


def _choose_row_tile(rows, n, itemsize, tile_cap_bytes):
    """Row tile: dtype-aware sublane alignment, VMEM-capped, >= ~8 grid blocks
    when possible so both v7x TensorCores (and the DMA pipeline) stay fed."""
    sub = 16 if itemsize == 2 else (32 if itemsize == 1 else 8)
    if rows <= sub:
        return rows                                         # full-dim block (legal)
    cap = max(sub, (tile_cap_bytes // (itemsize * max(n, 1))) // sub * sub)
    want = -(-rows // 8)                                     # ceil(rows / 8) blocks target
    want = -(-want // sub) * sub                             # round up to sublane multiple
    return max(sub, min(cap, want))


def sparsemax(x, dim=-1):
    """Sparsemax forward with the semantics of BLOX Sparsemax.forward."""
    original_shape = x.shape
    n = x.shape[dim]
    x2d = x.reshape(-1, n)                                   # mirrors x.view(-1, x.size(dim))
    rows = x2d.shape[0]

    itemsize = x2d.dtype.itemsize
    tile_cap, vmem_limit = _vmem_budget()
    tm = _choose_row_tile(rows, n, itemsize, tile_cap)

    out2d = pl.pallas_call(
        functools.partial(_sparsemax_kernel, num_iters=_NUM_ITERS),
        out_shape=jax.ShapeDtypeStruct((rows, n), x.dtype),
        grid=(pl.cdiv(rows, tm),),
        in_specs=[pl.BlockSpec((tm, n), lambda i: (i, 0))],
        out_specs=pl.BlockSpec((tm, n), lambda i: (i, 0)),
        compiler_params=pltpu.CompilerParams(
            dimension_semantics=("parallel",),
            vmem_limit_bytes=vmem_limit),
    )(x2d)

    return out2d.reshape(original_shape)


def _sparsemax_ref(x, dim=-1):
    """Pure-JAX reference mirroring the PyTorch (sort-based) implementation."""
    original_shape = x.shape
    n = x.shape[dim]
    x = x.reshape(-1, n).astype(jnp.float32)
    x = x - jnp.max(x, axis=1, keepdims=True)
    zs = -jnp.sort(-x, axis=1)                               # descending sort
    rng = jnp.arange(1, n + 1, dtype=jnp.float32)[None, :]
    bound = 1.0 + rng * zs
    cumsum = jnp.cumsum(zs, axis=1)
    is_gt = (bound > cumsum).astype(jnp.float32)
    k = jnp.max(is_gt * rng, axis=1, keepdims=True)
    zs_sparse = is_gt * zs
    taus = (jnp.sum(zs_sparse, axis=1, keepdims=True) - 1.0) / k
    out = jnp.maximum(jnp.zeros_like(x), x - taus)
    return out.reshape(original_shape)


if __name__ == "__main__":
    key = jax.random.PRNGKey(0)

    # small NCHW input consistent with the module's "any shape, last-dim logits" forward
    x = jax.random.normal(key, (2, 4, 16, 16), dtype=jnp.float32) * 2.0
    y = jax.block_until_ready(sparsemax(x))
    y_ref = _sparsemax_ref(x)
    assert y.shape == x.shape
    np.testing.assert_allclose(np.asarray(y), np.asarray(y_ref), rtol=1e-5, atol=1e-5)
    row_sums = np.asarray(jnp.sum(y, axis=-1))
    np.testing.assert_allclose(row_sums, np.ones_like(row_sums), rtol=1e-4, atol=1e-4)

    # second shape: lane-aligned logits axis, ragged row count (21 rows)
    x2 = jax.random.normal(jax.random.PRNGKey(1), (3, 7, 256), dtype=jnp.float32) * 3.0
    y2 = jax.block_until_ready(sparsemax(x2))
    np.testing.assert_allclose(np.asarray(y2), np.asarray(_sparsemax_ref(x2)),
                               rtol=1e-5, atol=1e-5)

    # near-uniform logits: slowest case for the support-shrinking iteration
    x3 = jax.random.normal(jax.random.PRNGKey(2), (4, 256), dtype=jnp.float32) * 0.01
    y3 = jax.block_until_ready(sparsemax(x3))
    np.testing.assert_allclose(np.asarray(y3), np.asarray(_sparsemax_ref(x3)),
                               rtol=1e-5, atol=1e-5)

    # TODO(synk): the module's custom backward() is not implemented (forward-only kernel).
    print("KERNEL_OK")
</pallas_src>

<mosaic_0001>
module attributes {stable_mosaic.version = 11 : i64} {
  func.func @_sparsemax_kernel(%arg0: i32, %arg1: memref<16x16xf32, #tpu.memory_space<vmem>>, %arg2: memref<16x16xf32, #tpu.memory_space<vmem>>) attributes {dimension_semantics = [#tpu.dimension_semantics<parallel>], iteration_bounds = array<i64: 8>, scalar_prefetch = 0 : i64, scratch_operands = 0 : i64, tpu.core_type = #tpu.core_type<tc>, window_params = [{transform_indices = @transform_0, window_bounds = array<i64: 16, 16>}, {transform_indices = @transform_1, window_bounds = array<i64: 16, 16>}]} {
    %c0 = arith.constant 0 : index
    %c0_0 = arith.constant 0 : index
    %0 = vector.load %arg1[%c0, %c0_0] : memref<16x16xf32, #tpu.memory_space<vmem>>, vector<16x16xf32>
    %cst = arith.constant dense<0xFF800000> : vector<16xf32>
    %1 = vector.multi_reduction <maximumf>, %0, %cst [1] : vector<16x16xf32> to vector<16xf32>
    %2 = vector.shape_cast %1 : vector<16xf32> to vector<16x1xf32>
    %cst_1 = arith.constant -1.000000e+00 : f32
    %3 = vector.broadcast %cst_1 : f32 to vector<16x1xf32>
    %c0_i32 = arith.constant 0 : i32
    %4 = arith.addf %2, %3 : vector<16x1xf32>
    %5 = vector.broadcast %4 : vector<16x1xf32> to vector<16x16xf32>
    %6 = arith.subf %0, %5 : vector<16x16xf32>
    %cst_2 = arith.constant 0.000000e+00 : f32
    %7 = vector.broadcast %cst_2 : f32 to vector<16x16xf32>
    %8 = arith.maximumf %6, %7 : vector<16x16xf32>
    %cst_3 = arith.constant dense<0.000000e+00> : vector<16xf32>
    %9 = vector.multi_reduction <add>, %8, %cst_3 [1] : vector<16x16xf32> to vector<16xf32>
    %10 = vector.shape_cast %9 : vector<16xf32> to vector<16x1xf32>
    %cst_4 = arith.constant 0.000000e+00 : f32
    %11 = vector.broadcast %cst_4 : f32 to vector<16x16xf32>
    %12 = arith.cmpf ogt, %6, %11 : vector<16x16xf32>
    %13 = arith.extui %12 : vector<16x16xi1> to vector<16x16xi32>
    %14 = arith.sitofp %13 : vector<16x16xi32> to vector<16x16xf32>
    %cst_5 = arith.constant dense<0.000000e+00> : vector<16xf32>
    %15 = vector.multi_reduction <add>, %14, %cst_5 [1] : vector<16x16xf32> to vector<16xf32>
    %16 = vector.shape_cast %15 : vector<16xf32> to vector<16x1xf32>
    %cst_6 = arith.constant 1.000000e+00 : f32
    %17 = vector.broadcast %cst_6 : f32 to vector<16x1xf32>
    %18 = arith.subf %10, %17 : vector<16x1xf32>
    %cst_7 = arith.constant 1.000000e+00 : f32
    %19 = vector.broadcast %cst_7 : f32 to vector<16x1xf32>
    %20 = arith.maximumf %16, %19 : vector<16x1xf32>
    %21 = arith.divf %18, %20 : vector<16x1xf32>
    %22 = arith.addf %3, %21 : vector<16x1xf32>
    %c1_i32 = arith.constant 1 : i32
    %23 = arith.addf %2, %22 : vector<16x1xf32>
    %24 = vector.broadcast %23 : vector<16x1xf32> to vector<16x16xf32>
    %25 = arith.subf %0, %24 : vector<16x16xf32>
    %cst_8 = arith.constant 0.000000e+00 : f32
    %26 = vector.broadcast %cst_8 : f32 to vector<16x16xf32>
    %27 = arith.maximumf %25, %26 : vector<16x16xf32>
    %cst_9 = arith.constant dense<0.000000e+00> : vector<16xf32>
    %28 = vector.multi_reduction <add>, %27, %cst_9 [1] : vector<16x16xf32> to vector<16xf32>
    %29 = vector.shape_cast %28 : vector<16xf32> to vector<16x1xf32>
    %cst_10 = arith.constant 0.000000e+00 : f32
    %30 = vector.broadcast %cst_10 : f32 to vector<16x16xf32>
    %31 = arith.cmpf ogt, %25, %30 : vector<16x16xf32>
    %32 = arith.extui %31 : vector<16x16xi1> to vector<16x16xi32>
    %33 = arith.sitofp %32 : vector<16x16xi32> to vector<16x16xf32>
    %cst_11 = arith.constant dense<0.000000e+00> : vector<16xf32>
    %34 = vector.multi_reduction <add>, %33, %cst_11 [1] : vector<16x16xf32> to vector<16xf32>
    %35 = vector.shape_cast %34 : vector<16xf32> to vector<16x1xf32>
    %cst_12 = arith.constant 1.000000e+00 : f32
    %36 = vector.broadcast %cst_12 : f32 to vector<16x1xf32>
    %37 = arith.subf %29, %36 : vector<16x1xf32>
    %cst_13 = arith.constant 1.000000e+00 : f32
    %38 = vector.broadcast %cst_13 : f32 to vector<16x1xf32>
    %39 = arith.maximumf %35, %38 : vector<16x1xf32>
    %40 = arith.divf %37, %39 : vector<16x1xf32>
    %41 = arith.addf %22, %40 : vector<16x1xf32>
    %c2_i32 = arith.constant 2 : i32
    %42 = arith.addf %2, %41 : vector<16x1xf32>
    %43 = vector.broadcast %42 : vector<16x1xf32> to vector<16x16xf32>
    %44 = arith.subf %0, %43 : vector<16x16xf32>
    %cst_14 = arith.constant 0.000000e+00 : f32
    %45 = vector.broadcast %cst_14 : f32 to vector<16x16xf32>
    %46 = arith.maximumf %44, %45 : vector<16x16xf32>
    %cst_15 = arith.constant dense<0.000000e+00> : vector<16xf32>
    %47 = vector.multi_reduction <add>, %46, %cst_15 [1] : vector<16x16xf32> to vector<16xf32>
    %48 = vector.shape_cast %47 : vector<16xf32> to vector<16x1xf32>
    %cst_16 = arith.constant 0.000000e+00 : f32
    %49 = vector.broadcast %cst_16 : f32 to vector<16x16xf32>
    %50 = arith.cmpf ogt, %44, %49 : vector<16x16xf32>
    %51 = arith.extui %50 : vector<16x16xi1> to vector<16x16xi32>
    %52 = arith.sitofp %51 : vector<16x16xi32> to vector<16x16xf32>
    %cst_17 = arith.constant dense<0.000000e+00> : vector<16xf32>
    %53 = vector.multi_reduction <add>, %52, %cst_17 [1] : vector<16x16xf32> to vector<16xf32>
    %54 = vector.shape_cast %53 : vector<16xf32> to vector<16x1xf32>
    %cst_18 = arith.constant 1.000000e+00 : f32
    %55 = vector.broadcast %cst_18 : f32 to vector<16x1xf32>
    %56 = arith.subf %48, %55 : vector<16x1xf32>
    %cst_19 = arith.constant 1.000000e+00 : f32
    %57 = vector.broadcast %cst_19 : f32 to vector<16x1xf32>
    %58 = arith.maximumf %54, %57 : vector<16x1xf32>
    %59 = arith.divf %56, %58 : vector<16x1xf32>
    %60 = arith.addf %41, %59 : vector<16x1xf32>
    %c3_i32 = arith.constant 3 : i32
    %61 = arith.addf %2, %60 : vector<16x1xf32>
    %62 = vector.broadcast %61 : vector<16x1xf32> to vector<16x16xf32>
    %63 = arith.subf %0, %62 : vector<16x16xf32>
    %cst_20 = arith.constant 0.000000e+00 : f32
    %64 = vector.broadcast %cst_20 : f32 to vector<16x16xf32>
    %65 = arith.maximumf %63, %64 : vector<16x16xf32>
    %cst_21 = arith.constant dense<0.000000e+00> : vector<16xf32>
    %66 = vector.multi_reduction <add>, %65, %cst_21 [1] : vector<16x16xf32> to vector<16xf32>
    %67 = vector.shape_cast %66 : vector<16xf32> to vector<16x1xf32>
    %cst_22 = arith.constant 0.000000e+00 : f32
    %68 = vector.broadcast %cst_22 : f32 to vector<16x16xf32>
    %69 = arith.cmpf ogt, %63, %68 : vector<16x16xf32>
    %70 = arith.extui %69 : vector<16x16xi1> to vector<16x16xi32>
    %71 = arith.sitofp %70 : vector<16x16xi32> to vector<16x16xf32>
    %cst_23 = arith.constant dense<0.000000e+00> : vector<16xf32>
    %72 = vector.multi_reduction <add>, %71, %cst_23 [1] : vector<16x16xf32> to vector<16xf32>
    %73 = vector.shape_cast %72 : vector<16xf32> to vector<16x1xf32>
    %cst_24 = arith.constant 1.000000e+00 : f32
    %74 = vector.broadcast %cst_24 : f32 to vector<16x1xf32>
    %75 = arith.subf %67, %74 : vector<16x1xf32>
    %cst_25 = arith.constant 1.000000e+00 : f32
    %76 = vector.broadcast %cst_25 : f32 to vector<16x1xf32>
    %77 = arith.maximumf %73, %76 : vector<16x1xf32>
    %78 = arith.divf %75, %77 : vector<16x1xf32>
    %79 = arith.addf %60, %78 : vector<16x1xf32>
    %c4_i32 = arith.constant 4 : i32
    %80 = arith.addf %2, %79 : vector<16x1xf32>
    %81 = vector.broadcast %80 : vector<16x1xf32> to vector<16x16xf32>
    %82 = arith.subf %0, %81 : vector<16x16xf32>
    %cst_26 = arith.constant 0.000000e+00 : f32
    %83 = vector.broadcast %cst_26 : f32 to vector<16x16xf32>
    %84 = arith.maximumf %82, %83 : vector<16x16xf32>
    %cst_27 = arith.constant dense<0.000000e+00> : vector<16xf32>
    %85 = vector.multi_reduction <add>, %84, %cst_27 [1] : vector<16x16xf32> to vector<16xf32>
    %86 = vector.shape_cast %85 : vector<16xf32> to vector<16x1xf32>
    %cst_28 = arith.constant 0.000000e+00 : f32
    %87 = vector.broadcast %cst_28 : f32 to vector<16x16xf32>
    %88 = arith.cmpf ogt, %82, %87 : vector<16x16xf32>
    %89 = arith.extui %88 : vector<16x16xi1> to vector<16x16xi32>
    %90 = arith.sitofp %89 : vector<16x16xi32> to vector<16x16xf32>
    %cst_29 = arith.constant dense<0.000000e+00> : vector<16xf32>
    %91 = vector.multi_reduction <add>, %90, %cst_29 [1] : vector<16x16xf32> to vector<16xf32>
    %92 = vector.shape_cast %91 : vector<16xf32> to vector<16x1xf32>
    %cst_30 = arith.constant 1.000000e+00 : f32
    %93 = vector.broadcast %cst_30 : f32 to vector<16x1xf32>
    %94 = arith.subf %86, %93 : vector<16x1xf32>
    %cst_31 = arith.constant 1.000000e+00 : f32
    %95 = vector.broadcast %cst_31 : f32 to vector<16x1xf32>
    %96 = arith.maximumf %92, %95 : vector<16x1xf32>
    %97 = arith.divf %94, %96 : vector<16x1xf32>
    %98 = arith.addf %79, %97 : vector<16x1xf32>
    %c5_i32 = arith.constant 5 : i32
    %99 = arith.addf %2, %98 : vector<16x1xf32>
    %100 = vector.broadcast %99 : vector<16x1xf32> to vector<16x16xf32>
    %101 = arith.subf %0, %100 : vector<16x16xf32>
    %cst_32 = arith.constant 0.000000e+00 : f32
    %102 = vector.broadcast %cst_32 : f32 to vector<16x16xf32>
    %103 = arith.maximumf %101, %102 : vector<16x16xf32>
    %cst_33 = arith.constant dense<0.000000e+00> : vector<16xf32>
    %104 = vector.multi_reduction <add>, %103, %cst_33 [1] : vector<16x16xf32> to vector<16xf32>
    %105 = vector.shape_cast %104 : vector<16xf32> to vector<16x1xf32>
    %cst_34 = arith.constant 0.000000e+00 : f32
    %106 = vector.broadcast %cst_34 : f32 to vector<16x16xf32>
    %107 = arith.cmpf ogt, %101, %106 : vector<16x16xf32>
    %108 = arith.extui %107 : vector<16x16xi1> to vector<16x16xi32>
    %109 = arith.sitofp %108 : vector<16x16xi32> to vector<16x16xf32>
    %cst_35 = arith.constant dense<0.000000e+00> : vector<16xf32>
    %110 = vector.multi_reduction <add>, %109, %cst_35 [1] : vector<16x16xf32> to vector<16xf32>
    %111 = vector.shape_cast %110 : vector<16xf32> to vector<16x1xf32>
    %cst_36 = arith.constant 1.000000e+00 : f32
    %112 = vector.broadcast %cst_36 : f32 to vector<16x1xf32>
    %113 = arith.subf %105, %112 : vector<16x1xf32>
    %cst_37 = arith.constant 1.000000e+00 : f32
    %114 = vector.broadcast %cst_37 : f32 to vector<16x1xf32>
    %115 = arith.maximumf %111, %114 : vector<16x1xf32>
    %116 = arith.divf %113, %115 : vector<16x1xf32>
    %117 = arith.addf %98, %116 : vector<16x1xf32>
    %c6_i32 = arith.constant 6 : i32
    %118 = arith.addf %2, %117 : vector<16x1xf32>
    %119 = vector.broadcast %118 : vector<16x1xf32> to vector<16x16xf32>
    %120 = arith.subf %0, %119 : vector<16x16xf32>
    %cst_38 = arith.constant 0.000000e+00 : f32
    %121 = vector.broadcast %cst_38 : f32 to vector<16x16xf32>
    %122 = arith.maximumf %120, %121 : vector<16x16xf32>
    %cst_39 = arith.constant dense<0.000000e+00> : vector<16xf32>
    %123 = vector.multi_reduction <add>, %122, %cst_39 [1] : vector<16x16xf32> to vector<16xf32>
    %124 = vector.shape_cast %123 : vector<16xf32> to vector<16x1xf32>
    %cst_40 = arith.constant 0.000000e+00 : f32
    %125 = vector.broadcast %cst_40 : f32 to vector<16x16xf32>
    %126 = arith.cmpf ogt, %120, %125 : vector<16x16xf32>
    %127 = arith.extui %126 : vector<16x16xi1> to vector<16x16xi32>
    %128 = arith.sitofp %127 : vector<16x16xi32> to vector<16x16xf32>
    %cst_41 = arith.constant dense<0.000000e+00> : vector<16xf32>
    %129 = vector.multi_reduction <add>, %128, %cst_41 [1] : vector<16x16xf32> to vector<16xf32>
    %130 = vector.shape_cast %129 : vector<16xf32> to vector<16x1xf32>
    %cst_42 = arith.constant 1.000000e+00 : f32
    %131 = vector.broadcast %cst_42 : f32 to vector<16x1xf32>
    %132 = arith.subf %124, %131 : vector<16x1xf32>
    %cst_43 = arith.constant 1.000000e+00 : f32
    %133 = vector.broadcast %cst_43 : f32 to vector<16x1xf32>
    %134 = arith.maximumf %130, %133 : vector<16x1xf32>
    %135 = arith.divf %132, %134 : vector<16x1xf32>
    %136 = arith.addf %117, %135 : vector<16x1xf32>
    %c7_i32 = arith.constant 7 : i32
    %137 = arith.addf %2, %136 : vector<16x1xf32>
    %138 = vector.broadcast %137 : vector<16x1xf32> to vector<16x16xf32>
    %139 = arith.subf %0, %138 : vector<16x16xf32>
    %cst_44 = arith.constant 0.000000e+00 : f32
    %140 = vector.broadcast %cst_44 : f32 to vector<16x16xf32>
    %141 = arith.maximumf %139, %140 : vector<16x16xf32>
    %cst_45 = arith.constant dense<0.000000e+00> : vector<16xf32>
    %142 = vector.multi_reduction <add>, %141, %cst_45 [1] : vector<16x16xf32> to vector<16xf32>
    %143 = vector.shape_cast %142 : vector<16xf32> to vector<16x1xf32>
    %cst_46 = arith.constant 0.000000e+00 : f32
    %144 = vector.broadcast %cst_46 : f32 to vector<16x16xf32>
    %145 = arith.cmpf ogt, %139, %144 : vector<16x16xf32>
    %146 = arith.extui %145 : vector<16x16xi1> to vector<16x16xi32>
    %147 = arith.sitofp %146 : vector<16x16xi32> to vector<16x16xf32>
    %cst_47 = arith.constant dense<0.000000e+00> : vector<16xf32>
    %148 = vector.multi_reduction <add>, %147, %cst_47 [1] : vector<16x16xf32> to vector<16xf32>
    %149 = vector.shape_cast %148 : vector<16xf32> to vector<16x1xf32>
    %cst_48 = arith.constant 1.000000e+00 : f32
    %150 = vector.broadcast %cst_48 : f32 to vector<16x1xf32>
    %151 = arith.subf %143, %150 : vector<16x1xf32>
    %cst_49 = arith.constant 1.000000e+00 : f32
    %152 = vector.broadcast %cst_49 : f32 to vector<16x1xf32>
    %153 = arith.maximumf %149, %152 : vector<16x1xf32>
    %154 = arith.divf %151, %153 : vector<16x1xf32>
    %155 = arith.addf %136, %154 : vector<16x1xf32>
    %c8_i32 = arith.constant 8 : i32
    %156 = arith.addf %2, %155 : vector<16x1xf32>
    %157 = vector.broadcast %156 : vector<16x1xf32> to vector<16x16xf32>
    %158 = arith.subf %0, %157 : vector<16x16xf32>
    %cst_50 = arith.constant 0.000000e+00 : f32
    %159 = vector.broadcast %cst_50 : f32 to vector<16x16xf32>
    %160 = arith.maximumf %158, %159 : vector<16x16xf32>
    %cst_51 = arith.constant dense<0.000000e+00> : vector<16xf32>
    %161 = vector.multi_reduction <add>, %160, %cst_51 [1] : vector<16x16xf32> to vector<16xf32>
    %162 = vector.shape_cast %161 : vector<16xf32> to vector<16x1xf32>
    %cst_52 = arith.constant 0.000000e+00 : f32
    %163 = vector.broadcast %cst_52 : f32 to vector<16x16xf32>
    %164 = arith.cmpf ogt, %158, %163 : vector<16x16xf32>
    %165 = arith.extui %164 : vector<16x16xi1> to vector<16x16xi32>
    %166 = arith.sitofp %165 : vector<16x16xi32> to vector<16x16xf32>
    %cst_53 = arith.constant dense<0.000000e+00> : vector<16xf32>
    %167 = vector.multi_reduction <add>, %166, %cst_53 [1] : vector<16x16xf32> to vector<16xf32>
    %168 = vector.shape_cast %167 : vector<16xf32> to vector<16x1xf32>
    %cst_54 = arith.constant 1.000000e+00 : f32
    %169 = vector.broadcast %cst_54 : f32 to vector<16x1xf32>
    %170 = arith.subf %162, %169 : vector<16x1xf32>
    %cst_55 = arith.constant 1.000000e+00 : f32
    %171 = vector.broadcast %cst_55 : f32 to vector<16x1xf32>
    %172 = arith.maximumf %168, %171 : vector<16x1xf32>
    %173 = arith.divf %170, %172 : vector<16x1xf32>
    %174 = arith.addf %155, %173 : vector<16x1xf32>
    %c9_i32 = arith.constant 9 : i32
    %175 = arith.addf %2, %174 : vector<16x1xf32>
    %176 = vector.broadcast %175 : vector<16x1xf32> to vector<16x16xf32>
    %177 = arith.subf %0, %176 : vector<16x16xf32>
    %cst_56 = arith.constant 0.000000e+00 : f32
    %178 = vector.broadcast %cst_56 : f32 to vector<16x16xf32>
    %179 = arith.maximumf %177, %178 : vector<16x16xf32>
    %cst_57 = arith.constant dense<0.000000e+00> : vector<16xf32>
    %180 = vector.multi_reduction <add>, %179, %cst_57 [1] : vector<16x16xf32> to vector<16xf32>
    %181 = vector.shape_cast %180 : vector<16xf32> to vector<16x1xf32>
    %cst_58 = arith.constant 0.000000e+00 : f32
    %182 = vector.broadcast %cst_58 : f32 to vector<16x16xf32>
    %183 = arith.cmpf ogt, %177, %182 : vector<16x16xf32>
    %184 = arith.extui %183 : vector<16x16xi1> to vector<16x16xi32>
    %185 = arith.sitofp %184 : vector<16x16xi32> to vector<16x16xf32>
    %cst_59 = arith.constant dense<0.000000e+00> : vector<16xf32>
    %186 = vector.multi_reduction <add>, %185, %cst_59 [1] : vector<16x16xf32> to vector<16xf32>
    %187 = vector.shape_cast %186 : vector<16xf32> to vector<16x1xf32>
    %cst_60 = arith.constant 1.000000e+00 : f32
    %188 = vector.broadcast %cst_60 : f32 to vector<16x1xf32>
    %189 = arith.subf %181, %188 : vector<16x1xf32>
    %cst_61 = arith.constant 1.000000e+00 : f32
    %190 = vector.broadcast %cst_61 : f32 to vector<16x1xf32>
    %191 = arith.maximumf %187, %190 : vector<16x1xf32>
    %192 = arith.divf %189, %191 : vector<16x1xf32>
    %193 = arith.addf %174, %192 : vector<16x1xf32>
    %194 = arith.addf %2, %193 : vector<16x1xf32>
    %195 = vector.broadcast %194 : vector<16x1xf32> to vector<16x16xf32>
    %196 = arith.subf %0, %195 : vector<16x16xf32>
    %cst_62 = arith.constant 0.000000e+00 : f32
    %197 = vector.broadcast %cst_62 : f32 to vector<16x16xf32>
    %198 = arith.maximumf %196, %197 : vector<16x16xf32>
    %c0_63 = arith.constant 0 : index
    %c0_64 = arith.constant 0 : index
    %199 = vector.load %arg2[%c0_63, %c0_64] : memref<16x16xf32, #tpu.memory_space<vmem>>, vector<16x16xf32>
    tpu.vector_store %arg2[%c0_63, %c0_64], %198 {strides = array<i32>} : memref<16x16xf32, #tpu.memory_space<vmem>>, vector<16x16xf32>,
    return
  }
  func.func @transform_0(%arg0: i32) -> (i32, i32) {
    %c0_i32 = arith.constant 0 : i32
    %c0_i32_0 = arith.constant 0 : i32
    return %arg0, %c0_i32 : i32, i32
  }
  func.func @transform_1(%arg0: i32) -> (i32, i32) {
    %c0_i32 = arith.constant 0 : i32
    %c0_i32_0 = arith.constant 0 : i32
    return %arg0, %c0_i32 : i32, i32
  }
}

</mosaic_0001>

<bundles_post_ra>
// kernel: tpu_custom_call.1
= control target key start
LH: loop header
LB: loop body
LE: loop exit
PB: predicated region body
PF: predicated region fallthrough
CT: control target
= control target key end

     0   :  { %s652_s6 = smov 0   ;;  %s794_s0 = inlined_call_operand.vmem [shape: f32[128,16], index: 0, kind: input, shape index: {}]   ;;  %s795_s1 = inlined_call_operand.vmem [shape: f32[128,16], index: 1, kind: output, shape index: {}]  }
   0x1 LB: > { %s533_s7 = sadd.s32 4294967295, %s639_s6   ;;  %p537_p0 = scmp.ge.s32.totalorder %s639_s6, 1  ;;  %s639_s6 = sphi %s652_s6, %s11_s6  }
   0x2   : > { %p88_p1 = scmp.lt.s32.totalorder %s639_s6, 9 }
   0x4   : > { %p89_p2 = pnand %p537_p0, %p88_p1 }
   0x5   : > { %s538_s8 = sshll.u32 (!%p89_p2), %s533_s7, 1 }
   0x6   : > { %92 = sbr.rel (%p89_p2) target bundleno = 1815 (0x717), region = 24  ;;  %p109_p3 = scmp.lt.s32.totalorder (!%p89_p2), %s538_s8, 15 }
   0xb   : > { %s797_s8 = smov (!%p109_p3, %s538_s8), 15  ;;  %vm122_vm0 = vcmask 130048   ;;  %v641_v10 = vmov 0.0  }
   0xc   : > { %s539_s9 = sshll.u32 %s797_s8, 3 }
   0xd   : > { %s112_s12 = scalar_lea.vmem %s794_s0, %s539_s9  ;;  %s118_s15 = scalar_lea.vmem %s795_s1, %s539_s9 }
   0xe   : > { %v668_v0 = vld [vmem:[%s112_s12] sm:$0xff]  ;;  %v670_v1 = vld [vmem:[%s112_s12 + $0x8] sm:$0xff] }
   0xf   : > { %v123_v2 = vsel %vm122_vm0, %v668_v0, -inf  ;;  %v126_v3 = vsel %vm122_vm0, %v670_v1, -inf }
  0x10   : > { %124 = vmax.xlane.f32.xlu0 %v123_v2 }
  0x14   : > { %127 = vmax.xlane.f32.xlu0 %v126_v3 }
  0x99   : > { %v676_v4 = vpop.xlane.xlu0 %124 }
  0x9a   : > { %v129_v5 = vadd.f32 -1.0, %v676_v4 }
  0x9c   : > { %v131_v6 = vsub.f32 %v668_v0, %v129_v5 }
  0x9d   : > { %v680_v7 = vpop.xlane.xlu0 %127 }
  0x9e   : > { %vm141_vm1 = vcmp.gt.f32.partialorder %v131_v6, 0.0  ;;  %v133_v8 = vmax.f32 %v131_v6, 0.0  ;;  %v130_v9 = vadd.f32 -1.0, %v680_v7 }
  0x9f   : > { %v542_v11 = vsel %vm141_vm1, 1.0, %v641_v10 }
  0xa0   : > { %v147_v12 = vsel %vm122_vm0, %v542_v11, 0.0  ;;  %v135_v13 = vsel %vm122_vm0, %v133_v8, 0.0  ;;  %v132_v14 = vsub.f32 %v670_v1, %v130_v9 }
  0xa1   : > { %148 = vadd.xlane.f32.xlu1 %v147_v12  ;;  %136 = vadd.xlane.f32.xlu0 %v135_v13 }
  0xa2   : > { %vm142_vm2 = vcmp.gt.f32.partialorder %v132_v14, 0.0  ;;  %v134_v17 = vmax.f32 %v132_v14, 0.0 }
  0xa3   : > { %v543_v15 = vsel %vm142_vm2, 1.0, %v641_v10 }
  0xa4   : > { %v150_v16 = vsel %vm122_vm0, %v543_v15, 0.0  ;;  %v138_v18 = vsel %vm122_vm0, %v134_v17, 0.0 }
  0xa5   : > { %151 = vadd.xlane.f32.xlu1 %v150_v16 }
  0xa9   : > { %139 = vadd.xlane.f32.xlu1 %v138_v18 }
 0x12a   : > { %v149_v19 = vpop.xlane.xlu1 %148  ;;  %v137_v23 = vpop.xlane.xlu0 %136 }
 0x12b   : > { %v155_v20 = vmax.f32 %v149_v19, 1.0  ;;  %v544_v24 = vadd.f32 -1.0, %v137_v23 }
 0x12d   : > { %593 = vrcp.f32 %v155_v20 }
 0x12e   : > { %v152_v21 = vpop.xlane.xlu1 %151 }
 0x12f   : > { %v156_v22 = vmax.f32 %v152_v21, 1.0 }
 0x131   : > { %595 = vrcp.f32 %v156_v22 }
 0x132   : > { %v140_v26 = vpop.xlane.xlu1 %139 }
 0x133   : > { %v545_v29 = vadd.f32 -1.0, %v140_v26 }
 0x13a   : > { %v594_v25 = vpop.eup %593 }
 0x13b   : > { %v158_v27 = vmul.f32 %v594_v25, %v544_v24 }
 0x13d   : > { %v161_v28 = vadd.f32 -1.0, %v158_v27 }
 0x13e   : > { %v596_v30 = vpop.eup %595 }
 0x13f   : > { %v163_v31 = vadd.f32 %v161_v28, %v676_v4  ;;  %v160_v32 = vmul.f32 %v596_v30, %v545_v29 }
 0x141   : > { %v162_v33 = vadd.f32 -1.0, %v160_v32  ;;  %v165_v34 = vsub.f32 %v668_v0, %v163_v31 }
 0x143   : > { %v164_v35 = vadd.f32 %v162_v33, %v680_v7  ;;  %vm175_vm3 = vcmp.gt.f32.partialorder %v165_v34, 0.0  ;;  %v167_v39 = vmax.f32 %v165_v34, 0.0 }
 0x144   : > { %v546_v36 = vsel %vm175_vm3, 1.0, %v641_v10 }
 0x145   : > { %v181_v37 = vsel %vm122_vm0, %v546_v36, 0.0  ;;  %v166_v38 = vsub.f32 %v670_v1, %v164_v35  ;;  %v169_v42 = vsel %vm122_vm0, %v167_v39, 0.0 }
 0x146   : > { %182 = vadd.xlane.f32.xlu0 %v181_v37 }
 0x147   : > { %vm176_vm4 = vcmp.gt.f32.partialorder %v166_v38, 0.0  ;;  %v168_v43 = vmax.f32 %v166_v38, 0.0 }
 0x148   : > { %v547_v40 = vsel %vm176_vm4, 1.0, %v641_v10 }
 0x149   : > { %v184_v41 = vsel %vm122_vm0, %v547_v40, 0.0  ;;  %v172_v44 = vsel %vm122_vm0, %v168_v43, 0.0 }
 0x14a   : > { %185 = vadd.xlane.f32.xlu1 %v184_v41  ;;  %170 = vadd.xlane.f32.xlu0 %v169_v42 }
 0x14e   : > { %173 = vadd.xlane.f32.xlu1 %v172_v44 }
 0x1cf   : > { %v183_v45 = vpop.xlane.xlu0 %182 }
 0x1d0   : > { %v189_v46 = vmax.f32 %v183_v45, 1.0 }
 0x1d2   : > { %597 = vrcp.f32 %v189_v46 }
 0x1d3   : > { %v186_v47 = vpop.xlane.xlu1 %185  ;;  %v171_v49 = vpop.xlane.xlu0 %170 }
 0x1d4   : > { %v190_v48 = vmax.f32 %v186_v47, 1.0  ;;  %v548_v50 = vadd.f32 -1.0, %v171_v49 }
 0x1d6   : > { %599 = vrcp.f32 %v190_v48 }
 0x1d7   : > { %v174_v52 = vpop.xlane.xlu1 %173 }
 0x1d8   : > { %v549_v55 = vadd.f32 -1.0, %v174_v52 }
 0x1df   : > { %v598_v51 = vpop.eup %597 }
 0x1e0   : > { %v192_v53 = vmul.f32 %v598_v51, %v548_v50 }
 0x1e2   : > { %v195_v54 = vadd.f32 %v192_v53, %v161_v28 }
 0x1e3   : > { %v600_v56 = vpop.eup %599 }
 0x1e4   : > { %v194_v57 = vmul.f32 %v600_v56, %v549_v55  ;;  %v197_v58 = vadd.f32 %v195_v54, %v676_v4 }
 0x1e6   : > { %v196_v59 = vadd.f32 %v194_v57, %v162_v33  ;;  %v199_v60 = vsub.f32 %v668_v0, %v197_v58 }
 0x1e8   : > { %vm209_vm5 = vcmp.gt.f32.partialorder %v199_v60, 0.0  ;;  %v198_v61 = vadd.f32 %v196_v59, %v680_v7  ;;  %v201_v3 = vmax.f32 %v199_v60, 0.0 }
 0x1e9   : > { %v550_v62 = vsel %vm209_vm5, 1.0, %v641_v10 }
 0x1ea   : > { %v215_v63 = vsel %vm122_vm0, %v550_v62, 0.0  ;;  %v200_v2 = vsub.f32 %v670_v1, %v198_v61  ;;  %v203_v8 = vsel %vm122_vm0, %v201_v3, 0.0 }
 0x1eb   : > { %216 = vadd.xlane.f32.xlu0 %v215_v63 }
 0x1ec   : > { %vm210_vm6 = vcmp.gt.f32.partialorder %v200_v2, 0.0  ;;  %v202_v9 = vmax.f32 %v200_v2, 0.0 }
 0x1ed   : > { %v551_v5 = vsel %vm210_vm6, 1.0, %v641_v10 }
 0x1ee   : > { %v218_v6 = vsel %vm122_vm0, %v551_v5, 0.0  ;;  %v206_v11 = vsel %vm122_vm0, %v202_v9, 0.0 }
 0x1ef   : > { %219 = vadd.xlane.f32.xlu1 %v218_v6  ;;  %204 = vadd.xlane.f32.xlu0 %v203_v8 }
 0x1f3   : > { %207 = vadd.xlane.f32.xlu1 %v206_v11 }
 0x274   : > { %v217_v12 = vpop.xlane.xlu0 %216 }
 0x275   : > { %v223_v13 = vmax.f32 %v217_v12, 1.0 }
 0x277   : > { %601 = vrcp.f32 %v223_v13 }
 0x278   : > { %v220_v14 = vpop.xlane.xlu1 %219  ;;  %v205_v16 = vpop.xlane.xlu0 %204 }
 0x279   : > { %v224_v15 = vmax.f32 %v220_v14, 1.0  ;;  %v552_v17 = vadd.f32 -1.0, %v205_v16 }
 0x27b   : > { %603 = vrcp.f32 %v224_v15 }
 0x27c   : > { %v208_v19 = vpop.xlane.xlu1 %207 }
 0x27d   : > { %v553_v22 = vadd.f32 -1.0, %v208_v19 }
 0x284   : > { %v602_v18 = vpop.eup %601 }
 0x285   : > { %v226_v20 = vmul.f32 %v602_v18, %v552_v17 }
 0x287   : > { %v229_v21 = vadd.f32 %v226_v20, %v195_v54 }
 0x288   : > { %v604_v23 = vpop.eup %603 }
 0x289   : > { %v228_v24 = vmul.f32 %v604_v23, %v553_v22  ;;  %v231_v25 = vadd.f32 %v229_v21, %v676_v4 }
 0x28b   : > { %v230_v26 = vadd.f32 %v228_v24, %v196_v59  ;;  %v233_v27 = vsub.f32 %v668_v0, %v231_v25 }
 0x28d   : > { %vm243_vm7 = vcmp.gt.f32.partialorder %v233_v27, 0.0  ;;  %v232_v28 = vadd.f32 %v230_v26, %v680_v7  ;;  %v235_v32 = vmax.f32 %v233_v27, 0.0 }
 0x28e   : > { %v554_v29 = vsel %vm243_vm7, 1.0, %v641_v10 }
 0x28f   : > { %v249_v30 = vsel %vm122_vm0, %v554_v29, 0.0  ;;  %v234_v31 = vsub.f32 %v670_v1, %v232_v28  ;;  %v237_v35 = vsel %vm122_vm0, %v235_v32, 0.0 }
 0x290   : > { %250 = vadd.xlane.f32.xlu0 %v249_v30 }
 0x291   : > { %vm244_vm8 = vcmp.gt.f32.partialorder %v234_v31, 0.0  ;;  %v236_v36 = vmax.f32 %v234_v31, 0.0 }
 0x292   : > { %v555_v33 = vsel %vm244_vm8, 1.0, %v641_v10 }
 0x293   : > { %v252_v34 = vsel %vm122_vm0, %v555_v33, 0.0  ;;  %v240_v37 = vsel %vm122_vm0, %v236_v36, 0.0 }
 0x294   : > { %253 = vadd.xlane.f32.xlu1 %v252_v34  ;;  %238 = vadd.xlane.f32.xlu0 %v237_v35 }
 0x298   : > { %241 = vadd.xlane.f32.xlu1 %v240_v37 }
 0x319   : > { %v251_v38 = vpop.xlane.xlu0 %250 }
 0x31a   : > { %v257_v39 = vmax.f32 %v251_v38, 1.0 }
 0x31c   : > { %605 = vrcp.f32 %v257_v39 }
 0x31d   : > { %v254_v40 = vpop.xlane.xlu1 %253  ;;  %v239_v42 = vpop.xlane.xlu0 %238 }
 0x31e   : > { %v258_v41 = vmax.f32 %v254_v40, 1.0  ;;  %v556_v43 = vadd.f32 -1.0, %v239_v42 }
 0x320   : > { %607 = vrcp.f32 %v258_v41 }
 0x321   : > { %v242_v45 = vpop.xlane.xlu1 %241 }
 0x322   : > { %v557_v48 = vadd.f32 -1.0, %v242_v45 }
 0x329   : > { %v606_v44 = vpop.eup %605 }
 0x32a   : > { %v260_v46 = vmul.f32 %v606_v44, %v556_v43 }
 0x32c   : > { %v263_v47 = vadd.f32 %v260_v46, %v229_v21 }
 0x32d   : > { %v608_v49 = vpop.eup %607 }
 0x32e   : > { %v262_v50 = vmul.f32 %v608_v49, %v557_v48  ;;  %v265_v51 = vadd.f32 %v263_v47, %v676_v4 }
 0x330   : > { %v264_v52 = vadd.f32 %v262_v50, %v230_v26  ;;  %v267_v53 = vsub.f32 %v668_v0, %v265_v51 }
 0x332   : > { %vm277_vm9 = vcmp.gt.f32.partialorder %v267_v53, 0.0  ;;  %v266_v54 = vadd.f32 %v264_v52, %v680_v7  ;;  %v269_v58 = vmax.f32 %v267_v53, 0.0 }
 0x333   : > { %v558_v55 = vsel %vm277_vm9, 1.0, %v641_v10 }
 0x334   : > { %v283_v56 = vsel %vm122_vm0, %v558_v55, 0.0  ;;  %v268_v57 = vsub.f32 %v670_v1, %v266_v54  ;;  %v271_v61 = vsel %vm122_vm0, %v269_v58, 0.0 }
 0x335   : > { %284 = vadd.xlane.f32.xlu0 %v283_v56 }
 0x336   : > { %vm278_vm10 = vcmp.gt.f32.partialorder %v268_v57, 0.0  ;;  %v270_v62 = vmax.f32 %v268_v57, 0.0 }
 0x337   : > { %v559_v59 = vsel %vm278_vm10, 1.0, %v641_v10 }
 0x338   : > { %v286_v60 = vsel %vm122_vm0, %v559_v59, 0.0  ;;  %v274_v63 = vsel %vm122_vm0, %v270_v62, 0.0 }
 0x339   : > { %287 = vadd.xlane.f32.xlu1 %v286_v60  ;;  %272 = vadd.xlane.f32.xlu0 %v271_v61 }
 0x33d   : > { %275 = vadd.xlane.f32.xlu1 %v274_v63 }
 0x3be   : > { %v285_v2 = vpop.xlane.xlu0 %284 }
 0x3bf   : > { %v291_v3 = vmax.f32 %v285_v2, 1.0 }
 0x3c1   : > { %609 = vrcp.f32 %v291_v3 }
 0x3c2   : > { %v288_v5 = vpop.xlane.xlu1 %287  ;;  %v273_v8 = vpop.xlane.xlu0 %272 }
 0x3c3   : > { %v292_v6 = vmax.f32 %v288_v5, 1.0  ;;  %v560_v9 = vadd.f32 -1.0, %v273_v8 }
 0x3c5   : > { %611 = vrcp.f32 %v292_v6 }
 0x3c6   : > { %v276_v12 = vpop.xlane.xlu1 %275 }
 0x3c7   : > { %v561_v15 = vadd.f32 -1.0, %v276_v12 }
 0x3ce   : > { %v610_v11 = vpop.eup %609 }
 0x3cf   : > { %v294_v13 = vmul.f32 %v610_v11, %v560_v9 }
 0x3d1   : > { %v297_v14 = vadd.f32 %v294_v13, %v263_v47 }
 0x3d2   : > { %v612_v16 = vpop.eup %611 }
 0x3d3   : > { %v296_v17 = vmul.f32 %v612_v16, %v561_v15  ;;  %v299_v18 = vadd.f32 %v297_v14, %v676_v4 }
 0x3d5   : > { %v298_v19 = vadd.f32 %v296_v17, %v264_v52  ;;  %v301_v20 = vsub.f32 %v668_v0, %v299_v18 }
 0x3d7   : > { %vm311_vm11 = vcmp.gt.f32.partialorder %v301_v20, 0.0  ;;  %v300_v21 = vadd.f32 %v298_v19, %v680_v7  ;;  %v303_v25 = vmax.f32 %v301_v20, 0.0 }
 0x3d8   : > { %v562_v22 = vsel %vm311_vm11, 1.0, %v641_v10 }
 0x3d9   : > { %v317_v23 = vsel %vm122_vm0, %v562_v22, 0.0  ;;  %v302_v24 = vsub.f32 %v670_v1, %v300_v21  ;;  %v305_v28 = vsel %vm122_vm0, %v303_v25, 0.0 }
 0x3da   : > { %318 = vadd.xlane.f32.xlu0 %v317_v23 }
 0x3db   : > { %vm312_vm12 = vcmp.gt.f32.partialorder %v302_v24, 0.0  ;;  %v304_v29 = vmax.f32 %v302_v24, 0.0 }
 0x3dc   : > { %v563_v26 = vsel %vm312_vm12, 1.0, %v641_v10 }
 0x3dd   : > { %v320_v27 = vsel %vm122_vm0, %v563_v26, 0.0  ;;  %v308_v30 = vsel %vm122_vm0, %v304_v29, 0.0 }
 0x3de   : > { %321 = vadd.xlane.f32.xlu1 %v320_v27  ;;  %306 = vadd.xlane.f32.xlu0 %v305_v28 }
 0x3e2   : > { %309 = vadd.xlane.f32.xlu1 %v308_v30 }
 0x463   : > { %v319_v31 = vpop.xlane.xlu0 %318 }
 0x464   : > { %v325_v32 = vmax.f32 %v319_v31, 1.0 }
 0x466   : > { %613 = vrcp.f32 %v325_v32 }
 0x467   : > { %v322_v33 = vpop.xlane.xlu1 %321  ;;  %v307_v35 = vpop.xlane.xlu0 %306 }
 0x468   : > { %v326_v34 = vmax.f32 %v322_v33, 1.0  ;;  %v564_v36 = vadd.f32 -1.0, %v307_v35 }
 0x46a   : > { %615 = vrcp.f32 %v326_v34 }
 0x46b   : > { %v310_v38 = vpop.xlane.xlu1 %309 }
 0x46c   : > { %v565_v41 = vadd.f32 -1.0, %v310_v38 }
 0x473   : > { %v614_v37 = vpop.eup %613 }
 0x474   : > { %v328_v39 = vmul.f32 %v614_v37, %v564_v36 }
 0x476   : > { %v331_v40 = vadd.f32 %v328_v39, %v297_v14 }
 0x477   : > { %v616_v42 = vpop.eup %615 }
 0x478   : > { %v330_v43 = vmul.f32 %v616_v42, %v565_v41  ;;  %v333_v44 = vadd.f32 %v331_v40, %v676_v4 }
 0x47a   : > { %v332_v45 = vadd.f32 %v330_v43, %v298_v19  ;;  %v335_v46 = vsub.f32 %v668_v0, %v333_v44 }
 0x47c   : > { %vm345_vm13 = vcmp.gt.f32.partialorder %v335_v46, 0.0  ;;  %v334_v47 = vadd.f32 %v332_v45, %v680_v7  ;;  %v337_v51 = vmax.f32 %v335_v46, 0.0 }
 0x47d   : > { %v566_v48 = vsel %vm345_vm13, 1.0, %v641_v10 }
 0x47e   : > { %v351_v49 = vsel %vm122_vm0, %v566_v48, 0.0  ;;  %v336_v50 = vsub.f32 %v670_v1, %v334_v47  ;;  %v339_v54 = vsel %vm122_vm0, %v337_v51, 0.0 }
 0x47f   : > { %352 = vadd.xlane.f32.xlu0 %v351_v49 }
 0x480   : > { %vm346_vm14 = vcmp.gt.f32.partialorder %v336_v50, 0.0  ;;  %v338_v55 = vmax.f32 %v336_v50, 0.0 }
 0x481   : > { %v567_v52 = vsel %vm346_vm14, 1.0, %v641_v10 }
 0x482   : > { %v354_v53 = vsel %vm122_vm0, %v567_v52, 0.0  ;;  %v342_v56 = vsel %vm122_vm0, %v338_v55, 0.0 }
 0x483   : > { %355 = vadd.xlane.f32.xlu1 %v354_v53  ;;  %340 = vadd.xlane.f32.xlu0 %v339_v54 }
 0x487   : > { %343 = vadd.xlane.f32.xlu1 %v342_v56 }
 0x508   : > { %v353_v57 = vpop.xlane.xlu0 %352 }
 0x509   : > { %v359_v58 = vmax.f32 %v353_v57, 1.0 }
 0x50b   : > { %617 = vrcp.f32 %v359_v58 }
 0x50c   : > { %v356_v59 = vpop.xlane.xlu1 %355  ;;  %v341_v61 = vpop.xlane.xlu0 %340 }
 0x50d   : > { %v360_v60 = vmax.f32 %v356_v59, 1.0  ;;  %v568_v62 = vadd.f32 -1.0, %v341_v61 }
 0x50f   : > { %619 = vrcp.f32 %v360_v60 }
 0x510   : > { %v344_v2 = vpop.xlane.xlu1 %343 }
 0x511   : > { %v569_v6 = vadd.f32 -1.0, %v344_v2 }
 0x518   : > { %v618_v63 = vpop.eup %617 }
 0x519   : > { %v362_v3 = vmul.f32 %v618_v63, %v568_v62 }
 0x51b   : > { %v365_v5 = vadd.f32 %v362_v3, %v331_v40 }
 0x51c   : > { %v620_v8 = vpop.eup %619 }
 0x51d   : > { %v364_v9 = vmul.f32 %v620_v8, %v569_v6  ;;  %v367_v11 = vadd.f32 %v365_v5, %v676_v4 }
 0x51f   : > { %v366_v12 = vadd.f32 %v364_v9, %v332_v45  ;;  %v369_v13 = vsub.f32 %v668_v0, %v367_v11 }
 0x521   : > { %vm379_vm15 = vcmp.gt.f32.partialorder %v369_v13, 0.0  ;;  %v368_v14 = vadd.f32 %v366_v12, %v680_v7  ;;  %v371_v18 = vmax.f32 %v369_v13, 0.0 }
 0x522   : > { %v570_v15 = vsel %vm379_vm15, 1.0, %v641_v10 }
 0x523   : > { %v385_v16 = vsel %vm122_vm0, %v570_v15, 0.0  ;;  %v370_v17 = vsub.f32 %v670_v1, %v368_v14  ;;  %v373_v21 = vsel %vm122_vm0, %v371_v18, 0.0 }
 0x524   : > { %386 = vadd.xlane.f32.xlu0 %v385_v16 }
 0x525   : > { %vm380_vm1 = vcmp.gt.f32.partialorder %v370_v17, 0.0  ;;  %v372_v22 = vmax.f32 %v370_v17, 0.0 }
 0x526   : > { %v571_v19 = vsel %vm380_vm1, 1.0, %v641_v10 }
 0x527   : > { %v388_v20 = vsel %vm122_vm0, %v571_v19, 0.0  ;;  %v376_v23 = vsel %vm122_vm0, %v372_v22, 0.0 }
 0x528   : > { %389 = vadd.xlane.f32.xlu1 %v388_v20  ;;  %374 = vadd.xlane.f32.xlu0 %v373_v21 }
 0x52c   : > { %377 = vadd.xlane.f32.xlu1 %v376_v23 }
 0x5ad   : > { %v387_v24 = vpop.xlane.xlu0 %386 }
 0x5ae   : > { %v393_v25 = vmax.f32 %v387_v24, 1.0 }
 0x5b0   : > { %621 = vrcp.f32 %v393_v25 }
 0x5b1   : > { %v390_v26 = vpop.xlane.xlu1 %389  ;;  %v375_v28 = vpop.xlane.xlu0 %374 }
 0x5b2   : > { %v394_v27 = vmax.f32 %v390_v26, 1.0  ;;  %v572_v29 = vadd.f32 -1.0, %v375_v28 }
 0x5b4   : > { %623 = vrcp.f32 %v394_v27 }
 0x5b5   : > { %v378_v31 = vpop.xlane.xlu1 %377 }
 0x5b6   : > { %v573_v34 = vadd.f32 -1.0, %v378_v31 }
 0x5bd   : > { %v622_v30 = vpop.eup %621 }
 0x5be   : > { %v396_v32 = vmul.f32 %v622_v30, %v572_v29 }
 0x5c0   : > { %v399_v33 = vadd.f32 %v396_v32, %v365_v5 }
 0x5c1   : > { %v624_v35 = vpop.eup %623 }
 0x5c2   : > { %v398_v36 = vmul.f32 %v624_v35, %v573_v34  ;;  %v401_v37 = vadd.f32 %v399_v33, %v676_v4 }
 0x5c4   : > { %v400_v38 = vadd.f32 %v398_v36, %v366_v12  ;;  %v403_v39 = vsub.f32 %v668_v0, %v401_v37 }
 0x5c6   : > { %vm413_vm2 = vcmp.gt.f32.partialorder %v403_v39, 0.0  ;;  %v402_v40 = vadd.f32 %v400_v38, %v680_v7  ;;  %v405_v44 = vmax.f32 %v403_v39, 0.0 }
 0x5c7   : > { %v574_v41 = vsel %vm413_vm2, 1.0, %v641_v10 }
 0x5c8   : > { %v419_v42 = vsel %vm122_vm0, %v574_v41, 0.0  ;;  %v404_v43 = vsub.f32 %v670_v1, %v402_v40  ;;  %v407_v47 = vsel %vm122_vm0, %v405_v44, 0.0 }
 0x5c9   : > { %420 = vadd.xlane.f32.xlu0 %v419_v42 }
 0x5ca   : > { %vm414_vm3 = vcmp.gt.f32.partialorder %v404_v43, 0.0  ;;  %v406_v48 = vmax.f32 %v404_v43, 0.0 }
 0x5cb   : > { %v575_v45 = vsel %vm414_vm3, 1.0, %v641_v10 }
 0x5cc   : > { %v422_v46 = vsel %vm122_vm0, %v575_v45, 0.0  ;;  %v410_v49 = vsel %vm122_vm0, %v406_v48, 0.0 }
 0x5cd   : > { %423 = vadd.xlane.f32.xlu1 %v422_v46  ;;  %408 = vadd.xlane.f32.xlu0 %v407_v47 }
 0x5d1   : > { %411 = vadd.xlane.f32.xlu1 %v410_v49 }
 0x652   : > { %v421_v50 = vpop.xlane.xlu0 %420 }
 0x653   : > { %v427_v51 = vmax.f32 %v421_v50, 1.0 }
 0x655   : > { %625 = vrcp.f32 %v427_v51 }
 0x656   : > { %v424_v52 = vpop.xlane.xlu1 %423  ;;  %v409_v54 = vpop.xlane.xlu0 %408 }
 0x657   : > { %v428_v53 = vmax.f32 %v424_v52, 1.0  ;;  %v576_v55 = vadd.f32 -1.0, %v409_v54 }
 0x659   : > { %627 = vrcp.f32 %v428_v53 }
 0x65a   : > { %v412_v57 = vpop.xlane.xlu1 %411 }
 0x65b   : > { %v577_v60 = vadd.f32 -1.0, %v412_v57 }
 0x662   : > { %v626_v56 = vpop.eup %625 }
 0x663   : > { %v430_v58 = vmul.f32 %v626_v56, %v576_v55 }
 0x665   : > { %v433_v59 = vadd.f32 %v430_v58, %v399_v33 }
 0x666   : > { %v628_v61 = vpop.eup %627 }
 0x667   : > { %v432_v62 = vmul.f32 %v628_v61, %v577_v60  ;;  %v435_v63 = vadd.f32 %v433_v59, %v676_v4 }
 0x669   : > { %v434_v2 = vadd.f32 %v432_v62, %v400_v38  ;;  %v437_v3 = vsub.f32 %v668_v0, %v435_v63 }
 0x66b   : > { %vm447_vm4 = vcmp.gt.f32.partialorder %v437_v3, 0.0  ;;  %v436_v5 = vadd.f32 %v434_v2, %v680_v7  ;;  %v439_v11 = vmax.f32 %v437_v3, 0.0 }
 0x66c   : > { %v578_v6 = vsel %vm447_vm4, 1.0, %v641_v10 }
 0x66d   : > { %v453_v8 = vsel %vm122_vm0, %v578_v6, 0.0  ;;  %v438_v9 = vsub.f32 %v670_v1, %v436_v5  ;;  %v441_v14 = vsel %vm122_vm0, %v439_v11, 0.0 }
 0x66e   : > { %454 = vadd.xlane.f32.xlu0 %v453_v8 }
 0x66f   : > { %vm448_vm5 = vcmp.gt.f32.partialorder %v438_v9, 0.0  ;;  %v440_v15 = vmax.f32 %v438_v9, 0.0 }
 0x670   : > { %v579_v12 = vsel %vm448_vm5, 1.0, %v641_v10 }
 0x671   : > { %v456_v13 = vsel %vm122_vm0, %v579_v12, 0.0  ;;  %v444_v16 = vsel %vm122_vm0, %v440_v15, 0.0 }
 0x672   : > { %457 = vadd.xlane.f32.xlu1 %v456_v13  ;;  %442 = vadd.xlane.f32.xlu0 %v441_v14 }
 0x676   : > { %445 = vadd.xlane.f32.xlu1 %v444_v16 }
 0x6f7   : > { %v455_v17 = vpop.xlane.xlu0 %454 }
 0x6f8   : > { %v461_v18 = vmax.f32 %v455_v17, 1.0 }
 0x6fa   : > { %629 = vrcp.f32 %v461_v18 }
 0x6fb   : > { %v458_v19 = vpop.xlane.xlu1 %457  ;;  %v443_v21 = vpop.xlane.xlu0 %442 }
 0x6fc   : > { %v462_v20 = vmax.f32 %v458_v19, 1.0  ;;  %v580_v22 = vadd.f32 -1.0, %v443_v21 }
 0x6fe   : > { %631 = vrcp.f32 %v462_v20 }
 0x6ff   : > { %v446_v23 = vpop.xlane.xlu1 %445 }
 0x700   : > { %v581_v26 = vadd.f32 -1.0, %v446_v23 }
 0x707   : > { %v630_v10 = vpop.eup %629 }
 0x708   : > { %v464_v24 = vmul.f32 %v630_v10, %v580_v22 }
 0x70a   : > { %v467_v25 = vadd.f32 %v464_v24, %v433_v59 }
 0x70b   : > { %v632_v27 = vpop.eup %631 }
 0x70c   : > { %v469_v28 = vadd.f32 %v467_v25, %v676_v4  ;;  %v466_v29 = vmul.f32 %v632_v27, %v581_v26 }
 0x70e   : > { %v471_v30 = vsub.f32 %v668_v0, %v469_v28  ;;  %v468_v31 = vadd.f32 %v466_v29, %v434_v2 }
 0x710   : > { %v473_v32 = vmax.f32 %v471_v30, 0.0  ;;  %v470_v33 = vadd.f32 %v468_v31, %v680_v7 }
 0x712   : > { %475 = vst.msk [vmem:[%s118_s15] sm:$0xff] %vm122_vm0, %v473_v32  ;;  %v472_v34 = vsub.f32 %v670_v1, %v470_v33 }
 0x714   : > { %v474_v35 = vmax.f32 %v472_v34, 0.0 }
 0x716   : > { %476 = vst.msk [vmem:[%s118_s15 + $0x8] sm:$0xff] %vm122_vm0, %v474_v35 }
 0x717 PF: > { %s11_s6 = sadd.s32 1, %s639_s6  }
 0x718   : > { %p8_p4 = scmp.ge.s32.totalorder %s11_s6, 10  }
 0x71a   :  { %10 = sbr.rel (!%p8_p4) target bundleno = 1 (0x1), region = 54 }

</bundles_post_ra>
